<compile_context>
chip_gen: v7x
topology: tpu7x:2x2x1
jax: 0.10.0
libtpu: 0.0.40
codegen_flags: <defaults>
</compile_context>

<pallas_src>
import jax
import jax.numpy as jnp
from jax.experimental import pallas as pl
from jax.experimental.pallas import tpu as pltpu


def _round_up(x, m):
    return (x + m - 1) // m * m


def _vmem_capacity_bytes():
    try:
        return int(pltpu.get_tpu_info().vmem_capacity_bytes)
    except Exception:
        return 64 * 1024 * 1024  # conservative fallback (v7x per-TC VMEM)


def _make_kernel(hw_total, hw_tile):
    """Fused global-avg-pool (f32 sum; 1/HW folded into W) -> fc -> sigmoid.

    x_ref: (tb, C, hw_tile)   native activation dtype (C on sublanes, HW on lanes)
    w_ref: (C, NCp)           f32, pre-scaled by 1/(H*W), classes padded to 128
    b_ref: (1, NCp)           f32
    o_ref: (tb, NCp)          f32
    acc_ref: (tb, C)          f32 scratch accumulator (persists over HW axis)
    """
    ragged_hw = (hw_total % hw_tile) != 0

    def kernel(x_ref, w_ref, b_ref, o_ref, acc_ref):
        hw_i = pl.program_id(1)

        @pl.when(hw_i == 0)
        def _init():
            acc_ref[...] = jnp.zeros_like(acc_ref)

        x = x_ref[...]  # (tb, C, hw_tile) — no f32 materialization of the tile
        if ragged_hw:
            # Mask lanes past the true H*W extent on the (possibly OOB) last tile.
            pos = jax.lax.broadcasted_iota(jnp.int32, x.shape, 2) + hw_i * hw_tile
            x = jnp.where(pos < hw_total, x, jnp.zeros_like(x))

        # Streaming lane reduction, accumulated in f32.
        acc_ref[...] += jnp.sum(x, axis=-1, dtype=jnp.float32)

        @pl.when(hw_i == pl.num_programs(1) - 1)
        def _finalize():
            logits = jnp.dot(acc_ref[...], w_ref[...],
                             preferred_element_type=jnp.float32)
            o_ref[...] = jax.nn.sigmoid(logits + b_ref[...])

    return kernel


def mlc_forward(x_nchw, fc_weight, fc_bias, *, max_batch_tile=512):
    """x_nchw: [B, C, H, W]; fc_weight: [num_classes, C] (PyTorch layout);
    fc_bias: [num_classes]. Returns [B, num_classes] probabilities."""
    B, C, H, W = x_nchw.shape
    HW = H * W
    num_classes = fc_weight.shape[0]
    NCp = _round_up(num_classes, 128)  # lane-dense MXU N / output store

    # Free view: collapse contiguous trailing dims. No transpose, no dtype cast.
    x = x_nchw.reshape(B, C, HW)
    itemsize = jnp.dtype(x.dtype).itemsize

    # Fold the pooling divisor into the weights; pad classes to NCp (tiny arrays).
    w = fc_weight.T.astype(jnp.float32) / float(HW)             # (C, NC)
    w = jnp.pad(w, ((0, 0), (0, NCp - num_classes)))            # (C, NCp)
    b = jnp.pad(fc_bias.astype(jnp.float32),
                (0, NCp - num_classes)).reshape(1, NCp)

    # --- per-generation VMEM budgeting -------------------------------------
    vmem_cap = _vmem_capacity_bytes()
    vmem_limit = int(vmem_cap * 0.85)       # ~54 MiB on v7x, ~109 MiB on v5e/v6e
    per_buf_budget = vmem_limit // 4        # double-buffered x tile uses <= half

    # VMEM footprint of one sample's (C, HW) slab incl. (8,128) tile padding.
    c_pad = _round_up(C, 8)
    sample_vmem = c_pad * _round_up(HW, 128) * itemsize

    tb = None
    hw_tile = None
    fit = per_buf_budget // max(1, sample_vmem)   # whole samples per x buffer
    if fit >= 1:
        hw_tile = HW
        tb = int(min(B, max_batch_tile, fit))
        if tb >= B and B >= 16:
            # Ensure >= 2 batch tiles so both v7x TensorCores get work.
            tb = max(8, ((B // 2) // 8) * 8)
        if tb < B:
            tb = max(8, (tb // 8) * 8)       # keep output block sublane-aligned
            if tb * sample_vmem > per_buf_budget:
                tb = None                    # 8-row tile overshoots -> tile HW
    if tb is None:
        # Per-sample slab too big for the budget: also tile the HW axis.
        tb = B if B <= 8 else 8
        per_row = tb * c_pad * itemsize
        hw_tile = max(128, (per_buf_budget // max(1, per_row)) // 128 * 128)
        hw_tile = min(hw_tile, _round_up(HW, 128))

    nb = pl.cdiv(B, tb)
    n_hw = pl.cdiv(HW, hw_tile)

    out = pl.pallas_call(
        _make_kernel(HW, hw_tile),
        out_shape=jax.ShapeDtypeStruct((B, NCp), jnp.float32),
        grid=(nb, n_hw),
        in_specs=[
            pl.BlockSpec((tb, C, hw_tile), lambda i, j: (i, 0, j)),  # batch/HW tiled x
            pl.BlockSpec((C, NCp), lambda i, j: (0, 0)),             # resident W
            pl.BlockSpec((1, NCp), lambda i, j: (0, 0)),             # resident bias
        ],
        out_specs=pl.BlockSpec((tb, NCp), lambda i, j: (i, 0)),
        scratch_shapes=[pltpu.VMEM((tb, C), jnp.float32)],           # pooled-feat acc
        compiler_params=pltpu.CompilerParams(
            dimension_semantics=("parallel", "arbitrary"),
            vmem_limit_bytes=vmem_limit,
        ),
    )(x, w, b)
    return out[:, :num_classes]


def reference_forward(x_nchw, fc_weight, fc_bias):
    """Pure-JAX reference: global-avg-pool -> fc -> sigmoid (all f32)."""
    feat = jnp.mean(x_nchw.astype(jnp.float32), axis=(2, 3))           # (B, C)
    logits = feat @ fc_weight.T.astype(jnp.float32) + fc_bias.astype(jnp.float32)
    return jax.nn.sigmoid(logits)


if __name__ == "__main__":
    # Small shapes consistent with the forward: NCHW feature maps in,
    # [B, num_classes] probabilities out. C=128 plays the role of n_features
    # (lane-dense, as for real backbones).
    B, C, H, W = 2, 128, 16, 16
    NUM_CLASSES = 8

    key = jax.random.PRNGKey(0)
    kx, kw, kb = jax.random.split(key, 3)

    x = jax.random.normal(kx, (B, C, H, W), dtype=jnp.float32)
    # PyTorch-layout fc parameters: [num_classes, in_features].
    fc_weight = jax.random.normal(kw, (NUM_CLASSES, C), dtype=jnp.float32) * 0.05
    fc_bias = jax.random.normal(kb, (NUM_CLASSES,), dtype=jnp.float32) * 0.01

    out = jax.block_until_ready(mlc_forward(x, fc_weight, fc_bias))
    ref = jax.block_until_ready(reference_forward(x, fc_weight, fc_bias))

    assert out.shape == (B, NUM_CLASSES)
    assert jnp.allclose(out, ref, atol=1e-4, rtol=1e-4), "mismatch vs reference"

    print("KERNEL_OK")
</pallas_src>

<mosaic_0001>
module attributes {stable_mosaic.version = 11 : i64} {
  func.func @kernel(%arg0: i32, %arg1: i32, %arg2: memref<2x128x256xf32, #tpu.memory_space<vmem>>, %arg3: memref<128x128xf32, #tpu.memory_space<vmem>>, %arg4: memref<1x128xf32, #tpu.memory_space<vmem>>, %arg5: memref<2x128xf32, #tpu.memory_space<vmem>>, %arg6: memref<2x128xf32, #tpu.memory_space<vmem>>) attributes {dimension_semantics = [#tpu.dimension_semantics<parallel>, #tpu.dimension_semantics<arbitrary>], iteration_bounds = array<i64: 1, 1>, scalar_prefetch = 0 : i64, scratch_operands = 1 : i64, tpu.core_type = #tpu.core_type<tc>, window_params = [{transform_indices = @transform_0, window_bounds = array<i64: 2, 128, 256>}, {pipeline_mode = #tpu.pipeline_mode<synchronous>, transform_indices = @transform_1, window_bounds = array<i64: 128, 128>}, {pipeline_mode = #tpu.pipeline_mode<synchronous>, transform_indices = @transform_2, window_bounds = array<i64: 1, 128>}, {transform_indices = @transform_3, window_bounds = array<i64: 2, 128>}]} {
    %c0_i32 = arith.constant 0 : i32
    %0 = arith.cmpi eq, %arg1, %c0_i32 : i32
    %1 = arith.extui %0 : i1 to i32
    %c0_i32_0 = arith.constant 0 : i32
    %2 = arith.cmpi ne, %1, %c0_i32_0 : i32
    scf.if %2 {
      %cst_9 = arith.constant 0.000000e+00 : f32
      %11 = vector.broadcast %cst_9 : f32 to vector<2x128xf32>
      %c0_10 = arith.constant 0 : index
      %c0_11 = arith.constant 0 : index
      %12 = vector.load %arg6[%c0_10, %c0_11] : memref<2x128xf32, #tpu.memory_space<vmem>>, vector<2x128xf32>
      tpu.vector_store %arg6[%c0_10, %c0_11], %11 {strides = array<i32>} : memref<2x128xf32, #tpu.memory_space<vmem>>, vector<2x128xf32>,
    } else {
    }
    %c0 = arith.constant 0 : index
    %c0_1 = arith.constant 0 : index
    %c0_2 = arith.constant 0 : index
    %3 = vector.load %arg2[%c0, %c0_1, %c0_2] : memref<2x128x256xf32, #tpu.memory_space<vmem>>, vector<2x128x256xf32>
    %c0_3 = arith.constant 0 : index
    %c0_4 = arith.constant 0 : index
    %4 = vector.load %arg6[%c0_3, %c0_4] : memref<2x128xf32, #tpu.memory_space<vmem>>, vector<2x128xf32>
    %cst = arith.constant dense<0.000000e+00> : vector<2x128xf32>
    %5 = vector.multi_reduction <add>, %3, %cst [2] : vector<2x128x256xf32> to vector<2x128xf32>
    %6 = arith.addf %4, %5 : vector<2x128xf32>
    %c0_5 = arith.constant 0 : index
    %c0_6 = arith.constant 0 : index
    %7 = vector.load %arg6[%c0_5, %c0_6] : memref<2x128xf32, #tpu.memory_space<vmem>>, vector<2x128xf32>
    tpu.vector_store %arg6[%c0_5, %c0_6], %6 {strides = array<i32>} : memref<2x128xf32, #tpu.memory_space<vmem>>, vector<2x128xf32>,
    %c0_i32_7 = arith.constant 0 : i32
    %8 = arith.cmpi eq, %arg1, %c0_i32_7 : i32
    %9 = arith.extui %8 : i1 to i32
    %c0_i32_8 = arith.constant 0 : i32
    %10 = arith.cmpi ne, %9, %c0_i32_8 : i32
    scf.if %10 {
      %c0_9 = arith.constant 0 : index
      %c0_10 = arith.constant 0 : index
      %11 = vector.load %arg6[%c0_9, %c0_10] : memref<2x128xf32, #tpu.memory_space<vmem>>, vector<2x128xf32>
      %c0_11 = arith.constant 0 : index
      %c0_12 = arith.constant 0 : index
      %12 = vector.load %arg3[%c0_11, %c0_12] : memref<128x128xf32, #tpu.memory_space<vmem>>, vector<128x128xf32>
      %cst_13 = arith.constant dense<0.000000e+00> : vector<2x128xf32>
      %13 = tpu.matmul %11, %12, %cst_13 {dimension_numbers = #tpu.dot_dimension_numbers<[1], [0], [0], [1], [0, 0, 1, 1], [], []>} : vector<2x128xf32>, vector<128x128xf32>, vector<2x128xf32> -> vector<2x128xf32>
      %c0_14 = arith.constant 0 : index
      %c0_15 = arith.constant 0 : index
      %14 = vector.load %arg4[%c0_14, %c0_15] : memref<1x128xf32, #tpu.memory_space<vmem>>, vector<1x128xf32>
      %15 = vector.broadcast %14 : vector<1x128xf32> to vector<2x128xf32>
      %16 = arith.addf %13, %15 : vector<2x128xf32>
      %17 = arith.negf %16 : vector<2x128xf32>
      %18 = math.exp %17 : vector<2x128xf32>
      %cst_16 = arith.constant 1.000000e+00 : f32
      %19 = vector.broadcast %cst_16 : f32 to vector<2x128xf32>
      %20 = arith.addf %19, %18 : vector<2x128xf32>
      %21 = arith.divf %19, %20 : vector<2x128xf32>
      %c0_17 = arith.constant 0 : index
      %c0_18 = arith.constant 0 : index
      %22 = vector.load %arg5[%c0_17, %c0_18] : memref<2x128xf32, #tpu.memory_space<vmem>>, vector<2x128xf32>
      tpu.vector_store %arg5[%c0_17, %c0_18], %21 {strides = array<i32>} : memref<2x128xf32, #tpu.memory_space<vmem>>, vector<2x128xf32>,
    } else {
    }
    return
  }
  func.func @transform_0(%arg0: i32, %arg1: i32) -> (i32, i32, i32) {
    %c0_i32 = arith.constant 0 : i32
    %c0_i32_0 = arith.constant 0 : i32
    return %arg0, %c0_i32, %arg1 : i32, i32, i32
  }
  func.func @transform_1(%arg0: i32, %arg1: i32) -> (i32, i32) {
    %c0_i32 = arith.constant 0 : i32
    %c0_i32_0 = arith.constant 0 : i32
    %c0_i32_1 = arith.constant 0 : i32
    return %c0_i32, %c0_i32_0 : i32, i32
  }
  func.func @transform_2(%arg0: i32, %arg1: i32) -> (i32, i32) {
    %c0_i32 = arith.constant 0 : i32
    %c0_i32_0 = arith.constant 0 : i32
    %c0_i32_1 = arith.constant 0 : i32
    return %c0_i32, %c0_i32_0 : i32, i32
  }
  func.func @transform_3(%arg0: i32, %arg1: i32) -> (i32, i32) {
    %c0_i32 = arith.constant 0 : i32
    %c0_i32_0 = arith.constant 0 : i32
    return %arg0, %c0_i32 : i32, i32
  }
}

</mosaic_0001>

<bundles_post_ra>
// kernel: tpu_custom_call.1
= control target key start
LH: loop header
LB: loop body
LE: loop exit
PB: predicated region body
PF: predicated region fallthrough
CT: control target
= control target key end

     0   :  { %8 = vsyncpa [#allocation4], 0  ;;  %s937_s0 = inlined_call_operand.hbm [shape: f32[2,128,256], index: 0, kind: input, shape index: {}]   ;;  %s938_s1 = inlined_call_operand.hbm [shape: f32[128,128], index: 1, kind: input, shape index: {}]   ;;  %s939_s2 = inlined_call_operand.vmem [shape: f32[1,128], index: 2, kind: input, shape index: {}]   ;;  %s940_s3 = inlined_call_operand.hbm [shape: f32[2,128], index: 3, kind: output, shape index: {}]  }
   0x1   :  { %9 = vsyncpa [#allocation7], 0 }
   0x2   :  { %10 = vsyncpa [#allocation5], 0  ;;  %s720_s12 = smov [#allocation3]   ;;  %s648_s16 = scalar_lea.hbm %s937_s0, 8192 }
   0x3   :  { %s16_s13 = sshll.u32 %s720_s12, 4  ;;  %p649_p0 = scmp.ne.s32.totalorder %s937_s0, %s648_s16  ;;  %s17_s13 = int_to_ptr.vmem [resolvable:$true] %s16_s13 }
   0x4   :  { %p652_p1 = scmp.lt.u32.totalorder %s648_s16, %s937_s0 }
   0x6   :  { %p654_p2 = pnand %p652_p1, %p649_p0 }
   0x8   :  { %657 = shalt.err (!%p654_p2)
}
   0x9   :  { %s658_s21 = scalar_lea.vmem %s17_s13, 8192  ;;  %p663_p4 = scmp.lt.s32.totalorder %s17_s13, %s17_s13 }
   0xa   :  { %p659_p3 = scmp.ne.s32.totalorder %s17_s13, %s658_s21  ;;  %p664_p5 = scmp.lt.s32.totalorder %s658_s21, %s658_s21 }
   0xc   :  { %p665_p6 = por %p664_p5, %p663_p4 }
   0xe   :  { %p666_p7 = pnand %p665_p6, %p659_p3 }
  0x10   :  { %669 = shalt.err (!%p666_p7)
}
  0x11   :  { %s721_s22 = smov 256   ;;  %s722_s23 = smov 16  }
  0x12   :  { %22 = dma.hbm_to_vmem [thread:$0]  %s937_s0, 8192, %s17_s13, [#allocation4], %s721_s22, %s721_s22, %s722_s23  }
  0x13   :  { %s723_s26 = smov [#allocation6]   ;;  %s670_s30 = scalar_lea.hbm %s938_s1, 2048 }
  0x14   :  { %s28_s27 = sshll.u32 %s723_s26, 4  ;;  %p671_p8 = scmp.ne.s32.totalorder %s938_s1, %s670_s30  ;;  %s29_s27 = int_to_ptr.vmem [resolvable:$true] %s28_s27 }
  0x15   :  { %p674_p9 = scmp.lt.u32.totalorder %s670_s30, %s938_s1 }
  0x17   :  { %p676_p10 = pnand %p674_p9, %p671_p8 }
  0x19   :  { %679 = shalt.err (!%p676_p10)
}
  0x1a   :  { %s680_s8 = scalar_lea.vmem %s29_s27, 2048  ;;  %p685_p12 = scmp.lt.s32.totalorder %s29_s27, %s29_s27 }
  0x1b   :  { %p681_p11 = scmp.ne.s32.totalorder %s29_s27, %s680_s8  ;;  %p686_p13 = scmp.lt.s32.totalorder %s680_s8, %s680_s8 }
  0x1d   :  { %p687_p0 = por %p686_p13, %p685_p12 }
  0x1f   :  { %p688_p1 = pnand %p687_p0, %p681_p11 }
  0x21   :  { %691 = shalt.err (!%p688_p1)
}
  0x22   :  { %s724_s0 = smov 128   ;;  %s725_s9 = smov 8  }
  0x23   :  { %34 = dma.hbm_to_vmem [thread:$0]  %s938_s1, 2048, %s29_s27, [#allocation7], %s724_s0, %s724_s0, %s725_s9  }
  0x24   :  { %714 = dma.done.wait [#allocation4], 8192  }
  0x25   :  { %715 = vsyncadd [#allocation4], 4294959104 }
  0x26   :  { %716 = dma.done.wait [#allocation7], 2048  }
  0x27   :  { %717 = vsyncadd [#allocation7], 4294965248  ;;  %v80_v0 = vld [vmem:[#allocation3 + $0x100] sm:$0xff]  ;;  %v81_v1 = vld [vmem:[#allocation3 + $0x108] sm:$0xff]  ;;  %vm728_vm0 = vmmov 0   ;;  %vm252_vm1 = vcmask 130112  }
  0x28   :  { %v48_v2 = vld [vmem:[#allocation3] sm:$0xff]  ;;  %v161_v3 = vadd.f32 %v81_v1, %v80_v0  ;;  %v49_v4 = vld [vmem:[#allocation3 + $0x8] sm:$0xff]  ;;  %v82_v5 = vld [vmem:[#allocation3 + $0x110] sm:$0xff]  ;;  %vm259_vm2 = vcmask 195712   ;;  %vm266_vm3 = vcmask 261312   ;;  %vm273_vm4 = vcmask 326912  }
  0x29   :  { %v83_v6 = vld [vmem:[#allocation3 + $0x118] sm:$0xff]  ;;  %v113_v7 = vadd.f32 %v49_v4, %v48_v2  ;;  %v50_v8 = vld [vmem:[#allocation3 + $0x10] sm:$0xff]  ;;  %v84_v12 = vld [vmem:[#allocation3 + $0x120] sm:$0xff]  ;;  %vm280_vm5 = vcmask 392512   ;;  %vm287_vm6 = vcmask 458112   ;;  %vm294_vm7 = vcmask 523712  }
  0x2a   :  { %v51_v9 = vld [vmem:[#allocation3 + $0x18] sm:$0xff]  ;;  %162 = vadd.xlane.f32.xlu1 %v161_v3  ;;  %v164_v10 = vadd.f32 %v83_v6, %v82_v5  ;;  %v85_v13 = vld [vmem:[#allocation3 + $0x128] sm:$0xff]  ;;  %v52_v14 = vld [vmem:[#allocation3 + $0x20] sm:$0xff]  ;;  %vm301_vm8 = vcmask 589312   ;;  %vm308_vm9 = vcmask 654912   ;;  %vm315_vm10 = vcmask 720512  }
  0x2b   :  { %114 = vadd.xlane.f32.xlu0 %v113_v7  ;;  %v116_v11 = vadd.f32 %v51_v9, %v50_v8  ;;  %v53_v15 = vld [vmem:[#allocation3 + $0x28] sm:$0xff]  ;;  %v167_v16 = vadd.f32 %v85_v13, %v84_v12  ;;  %v86_v18 = vld [vmem:[#allocation3 + $0x130] sm:$0xff]  ;;  %v87_v19 = vld [vmem:[#allocation3 + $0x138] sm:$0xff]  ;;  %vm322_vm11 = vcmask 786112   ;;  %vm329_vm12 = vcmask 851712   ;;  %s729_s13 = smov [#allocation8]  }
  0x2c   :  { %v119_v17 = vadd.f32 %v53_v15, %v52_v14  ;;  %v54_v20 = vld [vmem:[#allocation3 + $0x30] sm:$0xff]  ;;  %v55_v21 = vld [vmem:[#allocation3 + $0x38] sm:$0xff]  ;;  %v170_v22 = vadd.f32 %v87_v19, %v86_v18  ;;  %v88_v24 = vld [vmem:[#allocation3 + $0x140] sm:$0xff]  ;;  %vm336_vm13 = vcmask 917312   ;;  %vm343_vm14 = vcmask 982912   ;;  %s546_s14 = sshll.u32 %s729_s13, 4  ;;  %s547_s14 = int_to_ptr.vmem [resolvable:$true] %s546_s14 }
  0x2d   :  { %v122_v23 = vadd.f32 %v55_v21, %v54_v20  ;;  %v89_v25 = vld [vmem:[#allocation3 + $0x148] sm:$0xff]  ;;  %v56_v26 = vld [vmem:[#allocation3 + $0x40] sm:$0xff]  ;;  %v90_v30 = vld [vmem:[#allocation3 + $0x150] sm:$0xff]  ;;  %vm350_vm15 = vcmask 1048512   ;;  %s692_s15 = scalar_lea.vmem %s547_s14, 32  ;;  %p697_p3 = scmp.lt.s32.totalorder %s547_s14, %s547_s14 }
  0x2e   :  { %165 = vadd.xlane.f32.xlu1 %v164_v10  ;;  %v57_v27 = vld [vmem:[#allocation3 + $0x48] sm:$0xff]  ;;  %v173_v28 = vadd.f32 %v89_v25, %v88_v24  ;;  %v91_v31 = vld [vmem:[#allocation3 + $0x158] sm:$0xff]  ;;  %v58_v32 = vld [vmem:[#allocation3 + $0x50] sm:$0xff]  ;;  %p693_p2 = scmp.ne.s32.totalorder %s547_s14, %s692_s15  ;;  %p698_p4 = scmp.lt.s32.totalorder %s692_s15, %s692_s15 }
  0x2f   :  { %117 = vadd.xlane.f32.xlu0 %v116_v11  ;;  %v125_v29 = vadd.f32 %v57_v27, %v56_v26  ;;  %v59_v33 = vld [vmem:[#allocation3 + $0x58] sm:$0xff]  ;;  %v176_v34 = vadd.f32 %v91_v31, %v90_v30  ;;  %v92_v36 = vld [vmem:[#allocation3 + $0x160] sm:$0xff]  ;;  %v93_v37 = vld [vmem:[#allocation3 + $0x168] sm:$0xff] }
  0x30   :  { %v128_v35 = vadd.f32 %v59_v33, %v58_v32  ;;  %v60_v38 = vld [vmem:[#allocation3 + $0x60] sm:$0xff]  ;;  %v61_v39 = vld [vmem:[#allocation3 + $0x68] sm:$0xff]  ;;  %v179_v40 = vadd.f32 %v93_v37, %v92_v36  ;;  %v94_v42 = vld [vmem:[#allocation3 + $0x170] sm:$0xff]  ;;  %p699_p5 = por %p698_p4, %p697_p3 }
  0x31   :  { %v131_v41 = vadd.f32 %v61_v39, %v60_v38  ;;  %v95_v43 = vld [vmem:[#allocation3 + $0x178] sm:$0xff]  ;;  %v62_v44 = vld [vmem:[#allocation3 + $0x70] sm:$0xff]  ;;  %v96_v48 = vld [vmem:[#allocation3 + $0x180] sm:$0xff] }
  0x32   :  { %168 = vadd.xlane.f32.xlu1 %v167_v16  ;;  %v63_v45 = vld [vmem:[#allocation3 + $0x78] sm:$0xff]  ;;  %v182_v46 = vadd.f32 %v95_v43, %v94_v42  ;;  %v97_v49 = vld [vmem:[#allocation3 + $0x188] sm:$0xff]  ;;  %v64_v50 = vld [vmem:[#allocation3 + $0x80] sm:$0xff]  ;;  %p700_p6 = pnand %p699_p5, %p693_p2 }
  0x33   :  { %120 = vadd.xlane.f32.xlu0 %v119_v17  ;;  %v134_v47 = vadd.f32 %v63_v45, %v62_v44  ;;  %v65_v51 = vld [vmem:[#allocation3 + $0x88] sm:$0xff]  ;;  %v185_v52 = vadd.f32 %v97_v49, %v96_v48  ;;  %v98_v54 = vld [vmem:[#allocation3 + $0x190] sm:$0xff]  ;;  %v99_v55 = vld [vmem:[#allocation3 + $0x198] sm:$0xff] }
  0x34   :  { %v137_v53 = vadd.f32 %v65_v51, %v64_v50  ;;  %v66_v56 = vld [vmem:[#allocation3 + $0x90] sm:$0xff]  ;;  %v67_v57 = vld [vmem:[#allocation3 + $0x98] sm:$0xff]  ;;  %v188_v58 = vadd.f32 %v99_v55, %v98_v54  ;;  %v100_v60 = vld [vmem:[#allocation3 + $0x1a0] sm:$0xff] }
  0x35   :  { %v140_v59 = vadd.f32 %v67_v57, %v66_v56  ;;  %v101_v61 = vld [vmem:[#allocation3 + $0x1a8] sm:$0xff]  ;;  %v68_v62 = vld [vmem:[#allocation3 + $0xa0] sm:$0xff]  ;;  %v102_v2 = vld [vmem:[#allocation3 + $0x1b0] sm:$0xff] }
  0x36   :  { %171 = vadd.xlane.f32.xlu1 %v170_v22  ;;  %v69_v63 = vld [vmem:[#allocation3 + $0xa8] sm:$0xff]  ;;  %v191_v0 = vadd.f32 %v101_v61, %v100_v60  ;;  %v103_v3 = vld [vmem:[#allocation3 + $0x1b8] sm:$0xff]  ;;  %v70_v4 = vld [vmem:[#allocation3 + $0xb0] sm:$0xff] }
  0x37   :  { %123 = vadd.xlane.f32.xlu0 %v122_v23  ;;  %v143_v1 = vadd.f32 %v69_v63, %v68_v62  ;;  %v71_v5 = vld [vmem:[#allocation3 + $0xb8] sm:$0xff]  ;;  %v194_v6 = vadd.f32 %v103_v3, %v102_v2  ;;  %v104_v8 = vld [vmem:[#allocation3 + $0x1c0] sm:$0xff]  ;;  %v105_v9 = vld [vmem:[#allocation3 + $0x1c8] sm:$0xff] }
  0x38   :  { %v146_v7 = vadd.f32 %v71_v5, %v70_v4  ;;  %v72_v10 = vld [vmem:[#allocation3 + $0xc0] sm:$0xff]  ;;  %v73_v11 = vld [vmem:[#allocation3 + $0xc8] sm:$0xff]  ;;  %v197_v12 = vadd.f32 %v105_v9, %v104_v8  ;;  %v106_v14 = vld [vmem:[#allocation3 + $0x1d0] sm:$0xff]  ;;  %v241_v9 = vlaneseq }
  0x39   :  { %v149_v13 = vadd.f32 %v73_v11, %v72_v10  ;;  %v107_v15 = vld [vmem:[#allocation3 + $0x1d8] sm:$0xff]  ;;  %v74_v16 = vld [vmem:[#allocation3 + $0xd0] sm:$0xff]  ;;  %v108_v20 = vld [vmem:[#allocation3 + $0x1e0] sm:$0xff] }
  0x3a   :  { %174 = vadd.xlane.f32.xlu1 %v173_v28  ;;  %v75_v17 = vld [vmem:[#allocation3 + $0xd8] sm:$0xff]  ;;  %v200_v18 = vadd.f32 %v107_v15, %v106_v14  ;;  %v109_v21 = vld [vmem:[#allocation3 + $0x1e8] sm:$0xff]  ;;  %v76_v22 = vld [vmem:[#allocation3 + $0xe0] sm:$0xff]  ;;  %v810_v14 = vshrl.u32 %v241_v9, 7 }
  0x3b   :  { %126 = vadd.xlane.f32.xlu0 %v125_v29  ;;  %v152_v19 = vadd.f32 %v75_v17, %v74_v16  ;;  %v77_v23 = vld [vmem:[#allocation3 + $0xe8] sm:$0xff]  ;;  %v203_v24 = vadd.f32 %v109_v21, %v108_v20  ;;  %v110_v26 = vld [vmem:[#allocation3 + $0x1f0] sm:$0xff]  ;;  %v111_v27 = vld [vmem:[#allocation3 + $0x1f8] sm:$0xff] }
  0x3c   :  { %v155_v25 = vadd.f32 %v77_v23, %v76_v22  ;;  %v78_v28 = vld [vmem:[#allocation3 + $0xf0] sm:$0xff]  ;;  %v79_v29 = vld [vmem:[#allocation3 + $0xf8] sm:$0xff]  ;;  %v440_v30 = vld [vmem:[#allocation6] sm:$0xff]  ;;  %v206_v32 = vadd.f32 %v111_v27, %v110_v26 }
  0x3d   :  { %v441_v31 = vld [vmem:[#allocation6 + $0x8] sm:$0xff]  ;;  %v442_v36 = vld [vmem:[#allocation6 + $0x10] sm:$0xff]  ;;  %v443_v37 = vld [vmem:[#allocation6 + $0x18] sm:$0xff] }
  0x3e   :  { %177 = vadd.xlane.f32.xlu1 %v176_v34  ;;  %v611_v33 = vpack.c.bf16 %v441_v31, %v440_v30  ;;  %v158_v34 = vadd.f32 %v79_v29, %v78_v28  ;;  %v614_v38 = vpack.c.bf16 %v443_v37, %v442_v36  ;;  %v444_v39 = vld [vmem:[#allocation6 + $0x20] sm:$0xff]  ;;  %v446_v42 = vld [vmem:[#allocation6 + $0x30] sm:$0xff]  ;;  %v447_v43 = vld [vmem:[#allocation6 + $0x38] sm:$0xff] }
  0x3f   :  { %129 = vadd.xlane.f32.xlu0 %v128_v35  ;;  %v726_v35 = vmov 0.0|0.0   ;;  %v620_v44 = vpack.c.bf16 %v447_v43, %v446_v42  ;;  %v448_v45 = vld [vmem:[#allocation6 + $0x40] sm:$0xff]  ;;  %v450_v49 = vld [vmem:[#allocation6 + $0x50] sm:$0xff]  ;;  %v451_v50 = vld [vmem:[#allocation6 + $0x58] sm:$0xff] }
  0x40   :  { %610 = vmatprep.subr.bf16.mxu0 %v726_v35  ;;  %v626_v51 = vpack.c.bf16 %v451_v50, %v450_v49  ;;  %v454_v55 = vld [vmem:[#allocation6 + $0x70] sm:$0xff]  ;;  %v455_v56 = vld [vmem:[#allocation6 + $0x78] sm:$0xff] }
  0x41   :  { %612 = vmatpush3.bf16.msra.mxu0 %v611_v33  ;;  %v632_v57 = vpack.c.bf16 %v455_v56, %v454_v55 }
  0x42   :  { %180 = vadd.xlane.f32.xlu1 %v179_v40  ;;  %613 = vmatprep.subr.bf16.mxu0 %v726_v35  ;;  %v445_v40 = vld [vmem:[#allocation6 + $0x28] sm:$0xff] }
  0x43   :  { %132 = vadd.xlane.f32.xlu0 %v131_v41  ;;  %v617_v41 = vpack.c.bf16 %v445_v40, %v444_v39 }
  0x45   :  { %615 = vmatpush3.bf16.msra.mxu0 %v614_v38 }
  0x46   :  { %183 = vadd.xlane.f32.xlu1 %v182_v46  ;;  %616 = vmatprep.subr.bf16.mxu0 %v726_v35  ;;  %v449_v46 = vld [vmem:[#allocation6 + $0x48] sm:$0xff] }
  0x47   :  { %135 = vadd.xlane.f32.xlu0 %v134_v47  ;;  %v727_v47 = vmov 0.0   ;;  %v623_v48 = vpack.c.bf16 %v449_v46, %v448_v45 }
  0x48   :  { %47 = vst [vmem:[#allocation2] sm:$0x3] %v727_v47  ;;  %607 = vmatprep.mubr.msk.f32.mxu0 %vm728_vm0, %v727_v47  ;;  %vm431_vm0 = vcmask 1041409  }
  0x49   :  { %618 = vmatpush3.bf16.msra.mxu0 %v617_v41 }
  0x4a   :  { %186 = vadd.xlane.f32.xlu1 %v185_v52  ;;  %619 = vmatprep.subr.bf16.mxu0 %v726_v35  ;;  %v452_v52 = vld [vmem:[#allocation6 + $0x60] sm:$0xff] }
  0x4b   :  { %138 = vadd.xlane.f32.xlu0 %v137_v53  ;;  %v453_v53 = vld [vmem:[#allocation6 + $0x68] sm:$0xff] }
  0x4c   :  { %v629_v54 = vpack.c.bf16 %v453_v53, %v452_v52 }
  0x4d   :  { %621 = vmatpush3.bf16.msra.mxu0 %v620_v44 }
  0x4e   :  { %189 = vadd.xlane.f32.xlu1 %v188_v58  ;;  %622 = vmatprep.subr.bf16.mxu0 %v726_v35 }
  0x4f   :  { %141 = vadd.xlane.f32.xlu0 %v140_v59 }
  0x51   :  { %624 = vmatpush3.bf16.msra.mxu0 %v623_v48 }
  0x52   :  { %192 = vadd.xlane.f32.xlu1 %v191_v0  ;;  %625 = vmatprep.subr.bf16.mxu0 %v726_v35 }
  0x53   :  { %144 = vadd.xlane.f32.xlu0 %v143_v1 }
  0x55   :  { %627 = vmatpush3.bf16.msra.mxu0 %v626_v51 }
  0x56   :  { %195 = vadd.xlane.f32.xlu1 %v194_v6  ;;  %628 = vmatprep.subr.bf16.mxu0 %v726_v35 }
  0x57   :  { %147 = vadd.xlane.f32.xlu0 %v146_v7 }
  0x59   :  { %630 = vmatpush3.bf16.msra.mxu0 %v629_v54 }
  0x5a   :  { %198 = vadd.xlane.f32.xlu1 %v197_v12  ;;  %631 = vmatprep.subr.bf16.mxu0 %v726_v35  ;;  %v242_v12 = vand.u32 127, %v241_v9 }
  0x5b   :  { %150 = vadd.xlane.f32.xlu0 %v149_v13 }
  0x5c   :  { %v247_v15 = vadd.s32 4294967288, %v242_v12  ;;  %v254_v16 = vadd.s32 4294967280, %v242_v12  ;;  %v261_v17 = vadd.s32 4294967272, %v242_v12  ;;  %v245_v21 = vsub.s32 %v242_v12, %v810_v14 }
  0x5d   :  { %633 = vmatpush3.bf16.msra.mxu0 %v632_v57  ;;  %v275_v22 = vadd.s32 4294967256, %v242_v12  ;;  %v289_v27 = vadd.s32 4294967240, %v242_v12  ;;  %v296_v28 = vadd.s32 4294967232, %v242_v12  ;;  %v303_v31 = vadd.s32 4294967224, %v242_v12 }
  0x5e   :  { %201 = vadd.xlane.f32.xlu1 %v200_v18  ;;  %v250_v23 = vsub.s32 %v247_v15, %v810_v14  ;;  %v264_v26 = vsub.s32 %v261_v17, %v810_v14  ;;  %v317_v35 = vadd.s32 4294967208, %v242_v12  ;;  %v324_v36 = vadd.s32 4294967200, %v242_v12 }
  0x5f   :  { %153 = vadd.xlane.f32.xlu0 %v152_v19  ;;  %v268_v19 = vadd.s32 4294967264, %v242_v12  ;;  %v331_v38 = vadd.s32 4294967192, %v242_v12  ;;  %v292_v39 = vsub.s32 %v289_v27, %v810_v14  ;;  %v829_v40 = vsub.s32 %v296_v28, %v810_v14 }
  0x60   :  { %v338_v42 = vadd.s32 4294967184, %v242_v12  ;;  %v835_v44 = vsub.s32 %v303_v31, %v810_v14  ;;  %v345_v47 = vadd.s32 4294967176, %v242_v12  ;;  %v845_v50 = vsub.s32 %v317_v35, %v810_v14 }
  0x61   :  { %v271_v30 = vsub.s32 %v268_v19, %v810_v14  ;;  %v848_v51 = vsub.s32 %v324_v36, %v810_v14  ;;  %v854_v55 = vsub.s32 %v331_v38, %v810_v14 }
  0x62   :  { %204 = vadd.xlane.f32.xlu1 %v203_v24  ;;  %v257_v24 = vsub.s32 %v254_v16, %v810_v14 }
  0x63   :  { %156 = vadd.xlane.f32.xlu0 %v155_v25  ;;  %v282_v25 = vadd.s32 4294967248, %v242_v12 }
  0x65   :  { %v285_v37 = vsub.s32 %v282_v25, %v810_v14 }
  0x66   :  { %207 = vadd.xlane.f32.xlu1 %v206_v32  ;;  %v310_v32 = vadd.s32 4294967216, %v242_v12  ;;  %v866_v12 = vsub.s32 %v345_v47, %v810_v14 }
  0x67   :  { %159 = vadd.xlane.f32.xlu0 %v158_v34  ;;  %v278_v34 = vsub.s32 %v275_v22, %v810_v14 }
  0x68   :  { %v838_v45 = vsub.s32 %v310_v32, %v810_v14 }
  0xb7   :  { %v774_v58 = vpop.xlane.xlu1 %162 }
  0xb8   :  { %v776_v59 = vpop.xlane.xlu0 %114  ;;  %v355_v52 = vrot.slane %v774_v58, %v245_v21 }
  0xb9   :  { %v246_v56 = vrot.slane %v776_v59, %v245_v21 }
  0xbb   :  { %v778_v60 = vpop.xlane.xlu1 %165 }
  0xbc   :  { %v780_v61 = vpop.xlane.xlu0 %117  ;;  %v359_v43 = vrot.slane %v778_v60, %v250_v23 }
  0xbd   :  { %v251_v48 = vrot.slane %v780_v61, %v250_v23 }
  0xbe   :  { %v360_v58 = vsel %vm252_vm1, %v359_v43, %v355_v52 }
  0xbf   :  { %v782_v62 = vpop.xlane.xlu1 %168  ;;  %v253_v59 = vsel %vm252_vm1, %v251_v48, %v246_v56 }
  0xc0   :  { %v784_v63 = vpop.xlane.xlu0 %120  ;;  %v364_v49 = vrot.slane %v782_v62, %v257_v24  ;;  %v860_v62 = vsub.s32 %v338_v42, %v810_v14 }
  0xc1   :  { %v258_v53 = vrot.slane %v784_v63, %v257_v24 }
  0xc3   :  { %v786_v0 = vpop.xlane.xlu1 %171  ;;  %v260_v16 = vsel %vm259_vm2, %v258_v53, %v253_v59 }
  0xc4   :  { %v788_v1 = vpop.xlane.xlu0 %123  ;;  %v369_v54 = vrot.slane %v786_v0, %v264_v26 }
  0xc5   :  { %v265_v57 = vrot.slane %v788_v1, %v264_v26  ;;  %v365_v1 = vsel %vm259_vm2, %v364_v49, %v360_v58 }
  0xc7   :  { %v790_v2 = vpop.xlane.xlu1 %174  ;;  %v267_v14 = vsel %vm266_vm3, %v265_v57, %v260_v16  ;;  %v112_v57 = vld [vmem:[#allocation2] sm:$0x3] }
  0xc8   :  { %v792_v3 = vpop.xlane.xlu0 %126  ;;  %v374_v60 = vrot.slane %v790_v2, %v271_v30 }
  0xc9   :  { %v272_v63 = vrot.slane %v792_v3, %v271_v30  ;;  %v370_v3 = vsel %vm266_vm3, %v369_v54, %v365_v1 }
  0xca   :  { %v375_v19 = vsel %vm273_vm4, %v374_v60, %v370_v3 }
  0xcb   :  { %v794_v4 = vpop.xlane.xlu1 %177 }
  0xcc   :  { %v796_v5 = vpop.xlane.xlu0 %129  ;;  %v379_v0 = vrot.slane %v794_v4, %v278_v34 }
  0xcd   :  { %v279_v2 = vrot.slane %v796_v5, %v278_v34 }
  0xce   :  { %v380_v23 = vsel %vm280_vm5, %v379_v0, %v375_v19 }
  0xcf   :  { %v798_v6 = vpop.xlane.xlu1 %180 }
  0xd0   :  { %v800_v7 = vpop.xlane.xlu0 %132  ;;  %v384_v15 = vrot.slane %v798_v6, %v285_v37  ;;  %v274_v6 = vsel %vm273_vm4, %v272_v63, %v267_v14  ;;  %v556_v63 = vld [vmem:[%s939_s2] ss:$0 sm:$0xff] }
  0xd1   :  { %v286_v4 = vrot.slane %v800_v7, %v285_v37  ;;  %v281_v25 = vsel %vm280_vm5, %v279_v2, %v274_v6 }
  0xd2   :  { %v385_v26 = vsel %vm287_vm6, %v384_v15, %v380_v23 }
  0xd3   :  { %v802_v8 = vpop.xlane.xlu1 %183  ;;  %v288_v27 = vsel %vm287_vm6, %v286_v4, %v281_v25 }
  0xd4   :  { %v804_v10 = vpop.xlane.xlu0 %135  ;;  %v389_v17 = vrot.slane %v802_v8, %v292_v39 }
  0xd5   :  { %v293_v21 = vrot.slane %v804_v10, %v292_v39 }
  0xd6   :  { %v390_v28 = vsel %vm294_vm7, %v389_v17, %v385_v26 }
  0xd7   :  { %v806_v11 = vpop.xlane.xlu1 %186  ;;  %v295_v30 = vsel %vm294_vm7, %v293_v21, %v288_v27 }
  0xd8   :  { %v808_v13 = vpop.xlane.xlu0 %138  ;;  %v394_v5 = vrot.slane %v806_v11, %v829_v40 }
  0xd9   :  { %v300_v24 = vrot.slane %v808_v13, %v829_v40 }
  0xda   :  { %v395_v31 = vsel %vm301_vm8, %v394_v5, %v390_v28 }
  0xdb   :  { %v812_v18 = vpop.xlane.xlu1 %189  ;;  %v302_v34 = vsel %vm301_vm8, %v300_v24, %v295_v30 }
  0xdc   :  { %v814_v20 = vpop.xlane.xlu0 %141  ;;  %v399_v7 = vrot.slane %v812_v18, %v835_v44 }
  0xdd   :  { %v307_v10 = vrot.slane %v814_v20, %v835_v44 }
  0xde   :  { %v400_v35 = vsel %vm308_vm9, %v399_v7, %v395_v31 }
  0xdf   :  { %v820_v29 = vpop.xlane.xlu1 %192  ;;  %v309_v38 = vsel %vm308_vm9, %v307_v10, %v302_v34 }
  0xe0   :  { %v823_v33 = vpop.xlane.xlu0 %144  ;;  %v404_v11 = vrot.slane %v820_v29, %v838_v45 }
  0xe1   :  { %v314_v13 = vrot.slane %v823_v33, %v838_v45 }
  0xe2   :  { %v405_v39 = vsel %vm315_vm10, %v404_v11, %v400_v35 }
  0xe3   :  { %v831_v41 = vpop.xlane.xlu1 %195  ;;  %v316_v42 = vsel %vm315_vm10, %v314_v13, %v309_v38 }
  0xe4   :  { %v840_v46 = vpop.xlane.xlu0 %147  ;;  %v409_v18 = vrot.slane %v831_v41, %v845_v50 }
  0xe5   :  { %v321_v20 = vrot.slane %v840_v46, %v845_v50 }
  0xe6   :  { %v410_v43 = vsel %vm322_vm11, %v409_v18, %v405_v39 }
  0xe7   :  { %v199_v61 = vpop.xlane.xlu1 %198  ;;  %v323_v45 = vsel %vm322_vm11, %v321_v20, %v316_v42 }
  0xe8   :  { %v151_v9 = vpop.xlane.xlu0 %150  ;;  %v414_v32 = vrot.slane %v199_v61, %v848_v51 }
  0xe9   :  { %v328_v36 = vrot.slane %v151_v9, %v848_v51 }
  0xea   :  { %v415_v46 = vsel %vm329_vm12, %v414_v32, %v410_v43 }
  0xeb   :  { %v202_v22 = vpop.xlane.xlu1 %201  ;;  %v330_v48 = vsel %vm329_vm12, %v328_v36, %v323_v45 }
  0xec   :  { %v154_v8 = vpop.xlane.xlu0 %153  ;;  %v419_v33 = vrot.slane %v202_v22, %v854_v55 }
  0xed   :  { %v335_v40 = vrot.slane %v154_v8, %v854_v55 }
  0xee   :  { %v420_v49 = vsel %vm336_vm13, %v419_v33, %v415_v46 }
  0xef   :  { %v205_v29 = vpop.xlane.xlu1 %204  ;;  %v337_v52 = vsel %vm336_vm13, %v335_v40, %v330_v48 }
  0xf0   :  { %v157_v37 = vpop.xlane.xlu0 %156  ;;  %v424_v41 = vrot.slane %v205_v29, %v860_v62 }
  0xf1   :  { %v342_v44 = vrot.slane %v157_v37, %v860_v62 }
  0xf2   :  { %v425_v53 = vsel %vm343_vm14, %v424_v41, %v420_v49 }
  0xf3   :  { %v208_v47 = vpop.xlane.xlu1 %207  ;;  %v344_v55 = vsel %vm343_vm14, %v342_v44, %v337_v52 }
  0xf4   :  { %v429_v50 = vrot.slane %v208_v47, %v866_v12  ;;  %v160_v51 = vpop.xlane.xlu0 %159 }
  0xf5   :  { %v349_v54 = vrot.slane %v160_v51, %v866_v12 }
  0xf6   :  { %v430_v56 = vsel %vm350_vm15, %v429_v50, %v425_v53 }
  0xf7   :  { %v351_v60 = vsel %vm350_vm15, %v349_v54, %v344_v55 }
  0xf8   :  { %v432_v61 = vsel %vm431_vm0, %v430_v56, %v351_v60 }
  0xf9   :  { %v434_v62 = vadd.f32 %v432_v61, %v112_v57 }
  0xfb   :  { %435 = vst [vmem:[#allocation2] sm:$0x3] %v434_v62 }
 0x102   :  { %v439_v58 = vld [vmem:[#allocation2] sm:$0x3] }
 0x103   :  { %608 = vmatmul.mubr.f32.vlgmr.msra.gmra.mrb[0].mxu0 %v439_v58 }
 0x1d6   :  { %v529_v0 = vpop.f32.mrb[0].mxu0 }
 0x1d7   :  { %v530_v9 = vadd.f32 %v556_v63, %v529_v0  ;;  %v609_v59 = vpop.f32.mrb[1].mxu0 }
 0x1d9   :  { %v557_v1 = vmul.f32 -1.442695, %v530_v9 }
 0x1db   :  { %644 = vpow2.f32 %v557_v1 }
 0x1e5   :  { %v645_v2 = vpop.eup %644 }
 0x1e6   :  { %v536_v12 = vadd.f32 1.0, %v645_v2 }
 0x1e8   :  { %646 = vrcp.f32 %v536_v12 }
 0x1f2   :  { %v647_v15 = vpop.eup %646 }
 0x1f3   :  { %539 = vst [vmem:[#allocation8] sm:$0x3] %v647_v15 }
 0x1f4   :  { %703 = shalt.err (!%p700_p6)
}
 0x1f5   :  { %s704_s17 = scalar_lea.hbm %s940_s3, 32 }
 0x1f6   :  { %p705_p7 = scmp.ne.s32.totalorder %s940_s3, %s704_s17  ;;  %p708_p8 = scmp.lt.u32.totalorder %s704_s17, %s940_s3 }
 0x1f8   :  { %p710_p9 = pnand %p708_p8, %p705_p7 }
 0x1fa   :  { %713 = shalt.err (!%p710_p9)
}
 0x1fb   :  { %549 = dma.vmem_to_hbm [thread:$0]  %s547_s14, 32, %s940_s3, [#allocation5]  }
 0x1fc   :  { %718 = dma.done.wait [#allocation5], 32  }
 0x1fd   :  { %719 = vsyncadd [#allocation5], 4294967264 }
 0x1fe   :  { %553 = vsyncpa [#allocation4], 1 }
 0x1ff   :  { %554 = vsyncpa [#allocation7], 1 }
 0x200   :  { %555 = vsyncpa [#allocation5], 1 }

</bundles_post_ra>
